<compile_context>
chip_gen: v6e
topology: v6e:2x2x1
jax: 0.10.0
libtpu: 0.0.40
codegen_flags: <defaults>
</compile_context>

<pallas_src>
import jax
import jax.numpy as jnp
from jax.experimental import pallas as pl
from jax.experimental.pallas import tpu as pltpu

VOICE_DIM = 192
FACE_DIM = 512
EMB_DIM = 128
MID_DIM = 128
OUT_DIM = 128
BN_EPS = 1e-5
NORM_EPS = 1e-12
SUBLANE = 16   # bf16-friendly row multiple (2 rows pack per sublane)


def _round_up(x, m):
    return (x + m - 1) // m * m


def _fop_kernel(
    v_ref, f_ref,
    wv_ref, bv_ref,                      # encoder_v: Linear with BN folded in
    wf_ref, bf_ref,                      # encoder_f: Linear with BN folded in
    wa_f_ref, wa_v_ref, ba1_ref,         # attention layer 1 (split halves of the concat), BN folded in
    wa2_ref, ba2_ref,                    # attention layer 2
    out_ref,                             # fused (block_b, 3*128) output slab
):
    # ---------------- encoder_v ----------------
    # Linear + folded BatchNorm -> ReLU -> Dropout(identity, eval) -> L2 normalize
    v = jnp.dot(v_ref[...], wv_ref[...], preferred_element_type=jnp.float32) + bv_ref[...]
    v = jnp.maximum(v, 0.0)
    v_sumsq = jnp.sum(v * v, axis=-1, keepdims=True)
    v = v * jax.lax.rsqrt(jnp.maximum(v_sumsq, NORM_EPS * NORM_EPS))

    # ---------------- encoder_f ----------------
    f = jnp.dot(f_ref[...], wf_ref[...], preferred_element_type=jnp.float32) + bf_ref[...]
    f = jnp.maximum(f, 0.0)
    f_sumsq = jnp.sum(f * f, axis=-1, keepdims=True)
    f = f * jax.lax.rsqrt(jnp.maximum(f_sumsq, NORM_EPS * NORM_EPS))

    # ---------------- gated fusion ----------------
    # cat((face, voice), dim=1) @ W1 == face @ W1_face + voice @ W1_voice
    wd = wa_f_ref.dtype
    h = (jnp.dot(f.astype(wd), wa_f_ref[...], preferred_element_type=jnp.float32)
         + jnp.dot(v.astype(wd), wa_v_ref[...], preferred_element_type=jnp.float32)
         + ba1_ref[...])
    h = jnp.maximum(h, 0.0)              # ReLU; Dropout(p=0) is identity
    att_logits = (jnp.dot(h.astype(wa2_ref.dtype), wa2_ref[...],
                          preferred_element_type=jnp.float32) + ba2_ref[...])
    att = jax.nn.sigmoid(att_logits)

    face_emb = jnp.tanh(f)
    voice_emb = jnp.tanh(v)
    # face*att + (1-att)*voice  ==  voice + att*(face - voice)   (2 fewer VALU ops)
    fused = voice_emb + att * (face_emb - voice_emb)

    # Single lane-dense (block_b, 384) store: [voice_emb | face_emb | fused]
    out_ref[...] = jnp.concatenate([voice_emb, face_emb, fused], axis=-1).astype(out_ref.dtype)


def fop_forward(voice_input, face_input, params, *, block_b=2048,
                use_bf16_matmul=True, out_dtype=jnp.bfloat16):
    """Run the FopModel forward pass. Returns (voice_emb, face_emb, fused_emb)."""
    B = voice_input.shape[0]

    # --- batch tile selection ---
    # * rows aligned to 16 (bf16 sublane packing; also fine for f32),
    # * cap at ~half the padded batch so the grid gets >= 2 steps whenever the batch
    #   allows it (v7x megacore sharding + pipeline overlap on all generations),
    # * default 2048 rows: bf16 I/O double-buffered footprint ~8.5 MiB, comfortably
    #   inside the 32 MiB default scoped VMEM (and v7x's 64 MiB physical).
    Bp_min = _round_up(B, SUBLANE)
    block_b = max(SUBLANE, _round_up(min(block_b, Bp_min), SUBLANE))
    if Bp_min > SUBLANE:
        half = _round_up(-(-Bp_min // 2), SUBLANE)
        block_b = min(block_b, half)
    Bp = _round_up(Bp_min, block_b)

    in_dtype = jnp.bfloat16 if use_bf16_matmul else jnp.float32
    v_in = voice_input.astype(in_dtype)
    f_in = face_input.astype(in_dtype)
    if Bp != B:
        # Host-side padding of the batch tail keeps all blocks full and stores unmasked.
        v_in = jnp.pad(v_in, ((0, Bp - B), (0, 0)))
        f_in = jnp.pad(f_in, ((0, Bp - B), (0, 0)))

    # bf16 MXU operands, f32 accumulation; biases stay f32 (tiny, added post-matmul).
    wv = params["wv"].astype(in_dtype)
    wf = params["wf"].astype(in_dtype)
    wa_f = params["wa_f"].astype(in_dtype)
    wa_v = params["wa_v"].astype(in_dtype)
    wa2 = params["wa2"].astype(in_dtype)

    inputs = (
        v_in, f_in,
        wv, params["bv"],
        wf, params["bf"],
        wa_f, wa_v, params["ba1"],
        wa2, params["ba2"],
    )

    grid = (Bp // block_b,)

    def batch_spec(feat_dim):
        return pl.BlockSpec((block_b, feat_dim), lambda i: (i, 0))

    def const_spec(arr):
        # Constant index_map: block never changes -> loaded once, stays resident in VMEM.
        return pl.BlockSpec(arr.shape, lambda i: (0, 0))

    in_specs = [batch_spec(VOICE_DIM), batch_spec(FACE_DIM)]
    in_specs += [const_spec(x) for x in inputs[2:]]
    out_specs = pl.BlockSpec((block_b, 3 * OUT_DIM), lambda i: (i, 0))
    out_shape = jax.ShapeDtypeStruct((Bp, 3 * OUT_DIM), out_dtype)

    flops_per_row = 2 * (VOICE_DIM * EMB_DIM + FACE_DIM * EMB_DIM
                         + 2 * EMB_DIM * MID_DIM + MID_DIM * OUT_DIM)
    weight_bytes = int(sum(int(x.size) * x.dtype.itemsize for x in inputs[2:]))
    out_itemsize = jnp.dtype(out_dtype).itemsize
    cost = pl.CostEstimate(
        flops=int(Bp) * flops_per_row,
        transcendentals=int(Bp) * (2 * EMB_DIM + OUT_DIM + 2),
        bytes_accessed=(int(v_in.size) * v_in.dtype.itemsize
                        + int(f_in.size) * f_in.dtype.itemsize
                        + int(Bp) * 3 * OUT_DIM * out_itemsize
                        + weight_bytes),
    )

    out = pl.pallas_call(
        _fop_kernel,
        out_shape=out_shape,
        grid=grid,
        in_specs=in_specs,
        out_specs=out_specs,
        compiler_params=pltpu.CompilerParams(dimension_semantics=("parallel",)),
        cost_estimate=cost,
    )(*inputs)

    voice_emb = out[:B, :EMB_DIM]
    face_emb = out[:B, EMB_DIM:2 * EMB_DIM]
    fused_emb = out[:B, 2 * EMB_DIM:]
    return voice_emb, face_emb, fused_emb


def make_params(key):
    """Build random parameters with BatchNorm (eval) pre-folded into the Linear layers."""
    ks = jax.random.split(key, 8)

    def lin(k, fan_in, fan_out):
        bound = 1.0 / jnp.sqrt(fan_in)
        kw, kb = jax.random.split(k)
        w = jax.random.uniform(kw, (fan_in, fan_out), jnp.float32, -bound, bound)
        b = jax.random.uniform(kb, (1, fan_out), jnp.float32, -bound, bound)
        return w, b

    def bn(k, dim):
        k1, k2, k3, k4 = jax.random.split(k, 4)
        gamma = 1.0 + 0.1 * jax.random.normal(k1, (1, dim), jnp.float32)
        beta = 0.1 * jax.random.normal(k2, (1, dim), jnp.float32)
        running_mean = 0.1 * jax.random.normal(k3, (1, dim), jnp.float32)
        running_var = 1.0 + 0.05 * jax.random.uniform(k4, (1, dim), jnp.float32)
        scale = gamma / jnp.sqrt(running_var + BN_EPS)
        shift = beta - running_mean * scale
        return scale, shift

    wv, bv = lin(ks[0], VOICE_DIM, EMB_DIM)
    sv, tv = bn(ks[1], EMB_DIM)
    wf, bf = lin(ks[2], FACE_DIM, EMB_DIM)
    sf, tf = bn(ks[3], EMB_DIM)
    wa1, ba1 = lin(ks[4], 2 * EMB_DIM, MID_DIM)   # operates on cat(face, voice)
    sa, ta = bn(ks[5], MID_DIM)
    wa2, ba2 = lin(ks[6], MID_DIM, OUT_DIM)

    # Host-side BN folding:  (x @ W + b) * s + t  ==  x @ (W * s) + (b * s + t)
    wv_f, bv_f = wv * sv, bv * sv + tv
    wf_f, bf_f = wf * sf, bf * sf + tf
    wa1_f, ba1_f = wa1 * sa, ba1 * sa + ta

    return {
        "wv": wv_f, "bv": bv_f,
        "wf": wf_f, "bf": bf_f,
        "wa_f": wa1_f[:EMB_DIM, :],   # first half multiplies the face embedding
        "wa_v": wa1_f[EMB_DIM:, :],   # second half multiplies the voice embedding
        "ba1": ba1_f,
        "wa2": wa2, "ba2": ba2,
    }


def _reference_forward(voice, face, params, *, matmul_dtype=jnp.bfloat16):
    """Pure-JAX reference with matching (bf16-operand, f32-accum) matmul precision."""
    def mm(x, w):
        return jnp.dot(x.astype(matmul_dtype), w.astype(matmul_dtype),
                       preferred_element_type=jnp.float32)

    def branch(x, w, b):
        y = jnp.maximum(mm(x, w) + b, 0.0)
        n = jnp.sqrt(jnp.sum(y * y, axis=-1, keepdims=True))
        return y / jnp.maximum(n, NORM_EPS)

    v = branch(voice, params["wv"], params["bv"])
    f = branch(face, params["wf"], params["bf"])
    h = jnp.maximum(mm(f, params["wa_f"]) + mm(v, params["wa_v"]) + params["ba1"], 0.0)
    att = jax.nn.sigmoid(mm(h, params["wa2"]) + params["ba2"])
    face_emb = jnp.tanh(f)
    voice_emb = jnp.tanh(v)
    fused = face_emb * att + (1.0 - att) * voice_emb
    return voice_emb, face_emb, fused


if __name__ == "__main__":
    B = 8
    key = jax.random.PRNGKey(0)
    k_v, k_f, k_p = jax.random.split(key, 3)
    voice = jax.random.normal(k_v, (B, VOICE_DIM), jnp.float32)
    face = jax.random.normal(k_f, (B, FACE_DIM), jnp.float32)
    params = make_params(k_p)

    voice_emb, face_emb, fused_emb = fop_forward(voice, face, params)
    jax.block_until_ready((voice_emb, face_emb, fused_emb))

    assert voice_emb.shape == (B, EMB_DIM)
    assert face_emb.shape == (B, EMB_DIM)
    assert fused_emb.shape == (B, OUT_DIM)

    # Correctness vs. a pure-JAX reference evaluated at matching (bf16 operand) precision.
    # Outputs are tanh/sigmoid-bounded so bf16 storage costs <~4e-3 absolute error.
    ref_v, ref_f, ref_fused = _reference_forward(voice, face, params)
    v32 = voice_emb.astype(jnp.float32)
    f32 = face_emb.astype(jnp.float32)
    fu32 = fused_emb.astype(jnp.float32)
    assert jnp.all(jnp.isfinite(fu32))
    assert jnp.allclose(v32, ref_v, rtol=2e-2, atol=2e-2)
    assert jnp.allclose(f32, ref_f, rtol=2e-2, atol=2e-2)
    assert jnp.allclose(fu32, ref_fused, rtol=2e-2, atol=2e-2)

    print("KERNEL_OK")
</pallas_src>

<mosaic_0001>
module attributes {stable_mosaic.version = 11 : i64} {
  func.func @_fop_kernel(%arg0: i32, %arg1: memref<16x192xbf16, #tpu.memory_space<vmem>>, %arg2: memref<16x512xbf16, #tpu.memory_space<vmem>>, %arg3: memref<192x128xbf16, #tpu.memory_space<vmem>>, %arg4: memref<1x128xf32, #tpu.memory_space<vmem>>, %arg5: memref<512x128xbf16, #tpu.memory_space<vmem>>, %arg6: memref<1x128xf32, #tpu.memory_space<vmem>>, %arg7: memref<128x128xbf16, #tpu.memory_space<vmem>>, %arg8: memref<128x128xbf16, #tpu.memory_space<vmem>>, %arg9: memref<1x128xf32, #tpu.memory_space<vmem>>, %arg10: memref<128x128xbf16, #tpu.memory_space<vmem>>, %arg11: memref<1x128xf32, #tpu.memory_space<vmem>>, %arg12: memref<16x384xbf16, #tpu.memory_space<vmem>>) attributes {dimension_semantics = [#tpu.dimension_semantics<parallel>], iteration_bounds = array<i64: 1>, scalar_prefetch = 0 : i64, scratch_operands = 0 : i64, tpu.core_type = #tpu.core_type<tc>, window_params = [{transform_indices = @transform_0, window_bounds = array<i64: 16, 192>}, {transform_indices = @transform_1, window_bounds = array<i64: 16, 512>}, {pipeline_mode = #tpu.pipeline_mode<synchronous>, transform_indices = @transform_2, window_bounds = array<i64: 192, 128>}, {pipeline_mode = #tpu.pipeline_mode<synchronous>, transform_indices = @transform_3, window_bounds = array<i64: 1, 128>}, {pipeline_mode = #tpu.pipeline_mode<synchronous>, transform_indices = @transform_4, window_bounds = array<i64: 512, 128>}, {pipeline_mode = #tpu.pipeline_mode<synchronous>, transform_indices = @transform_5, window_bounds = array<i64: 1, 128>}, {pipeline_mode = #tpu.pipeline_mode<synchronous>, transform_indices = @transform_6, window_bounds = array<i64: 128, 128>}, {pipeline_mode = #tpu.pipeline_mode<synchronous>, transform_indices = @transform_7, window_bounds = array<i64: 128, 128>}, {pipeline_mode = #tpu.pipeline_mode<synchronous>, transform_indices = @transform_8, window_bounds = array<i64: 1, 128>}, {pipeline_mode = #tpu.pipeline_mode<synchronous>, transform_indices = @transform_9, window_bounds = array<i64: 128, 128>}, {pipeline_mode = #tpu.pipeline_mode<synchronous>, transform_indices = @transform_10, window_bounds = array<i64: 1, 128>}, {transform_indices = @transform_11, window_bounds = array<i64: 16, 384>}]} {
    %c0 = arith.constant 0 : index
    %c0_0 = arith.constant 0 : index
    %0 = vector.load %arg1[%c0, %c0_0] : memref<16x192xbf16, #tpu.memory_space<vmem>>, vector<16x192xbf16>
    %c0_1 = arith.constant 0 : index
    %c0_2 = arith.constant 0 : index
    %1 = vector.load %arg3[%c0_1, %c0_2] : memref<192x128xbf16, #tpu.memory_space<vmem>>, vector<192x128xbf16>
    %cst = arith.constant dense<0.000000e+00> : vector<16x128xf32>
    %2 = tpu.matmul %0, %1, %cst {dimension_numbers = #tpu.dot_dimension_numbers<[1], [0], [0], [1], [0, 0, 1, 1], [], []>} : vector<16x192xbf16>, vector<192x128xbf16>, vector<16x128xf32> -> vector<16x128xf32>
    %c0_3 = arith.constant 0 : index
    %c0_4 = arith.constant 0 : index
    %3 = vector.load %arg4[%c0_3, %c0_4] : memref<1x128xf32, #tpu.memory_space<vmem>>, vector<1x128xf32>
    %4 = vector.broadcast %3 : vector<1x128xf32> to vector<16x128xf32>
    %5 = arith.addf %2, %4 : vector<16x128xf32>
    %cst_5 = arith.constant 0.000000e+00 : f32
    %6 = vector.broadcast %cst_5 : f32 to vector<16x128xf32>
    %7 = arith.maximumf %5, %6 : vector<16x128xf32>
    %8 = arith.mulf %7, %7 : vector<16x128xf32>
    %cst_6 = arith.constant dense<0.000000e+00> : vector<16xf32>
    %9 = vector.multi_reduction <add>, %8, %cst_6 [1] : vector<16x128xf32> to vector<16xf32>
    %10 = vector.shape_cast %9 : vector<16xf32> to vector<16x1xf32>
    %cst_7 = arith.constant 1.000000e-24 : f32
    %11 = vector.broadcast %cst_7 : f32 to vector<16x1xf32>
    %12 = arith.maximumf %10, %11 : vector<16x1xf32>
    %13 = math.rsqrt %12 : vector<16x1xf32>
    %14 = vector.broadcast %13 : vector<16x1xf32> to vector<16x128xf32>
    %15 = arith.mulf %7, %14 : vector<16x128xf32>
    %c0_8 = arith.constant 0 : index
    %c0_9 = arith.constant 0 : index
    %16 = vector.load %arg2[%c0_8, %c0_9] : memref<16x512xbf16, #tpu.memory_space<vmem>>, vector<16x512xbf16>
    %c0_10 = arith.constant 0 : index
    %c0_11 = arith.constant 0 : index
    %17 = vector.load %arg5[%c0_10, %c0_11] : memref<512x128xbf16, #tpu.memory_space<vmem>>, vector<512x128xbf16>
    %cst_12 = arith.constant dense<0.000000e+00> : vector<16x128xf32>
    %18 = tpu.matmul %16, %17, %cst_12 {dimension_numbers = #tpu.dot_dimension_numbers<[1], [0], [0], [1], [0, 0, 1, 1], [], []>} : vector<16x512xbf16>, vector<512x128xbf16>, vector<16x128xf32> -> vector<16x128xf32>
    %c0_13 = arith.constant 0 : index
    %c0_14 = arith.constant 0 : index
    %19 = vector.load %arg6[%c0_13, %c0_14] : memref<1x128xf32, #tpu.memory_space<vmem>>, vector<1x128xf32>
    %20 = vector.broadcast %19 : vector<1x128xf32> to vector<16x128xf32>
    %21 = arith.addf %18, %20 : vector<16x128xf32>
    %cst_15 = arith.constant 0.000000e+00 : f32
    %22 = vector.broadcast %cst_15 : f32 to vector<16x128xf32>
    %23 = arith.maximumf %21, %22 : vector<16x128xf32>
    %24 = arith.mulf %23, %23 : vector<16x128xf32>
    %cst_16 = arith.constant dense<0.000000e+00> : vector<16xf32>
    %25 = vector.multi_reduction <add>, %24, %cst_16 [1] : vector<16x128xf32> to vector<16xf32>
    %26 = vector.shape_cast %25 : vector<16xf32> to vector<16x1xf32>
    %cst_17 = arith.constant 1.000000e-24 : f32
    %27 = vector.broadcast %cst_17 : f32 to vector<16x1xf32>
    %28 = arith.maximumf %26, %27 : vector<16x1xf32>
    %29 = math.rsqrt %28 : vector<16x1xf32>
    %30 = vector.broadcast %29 : vector<16x1xf32> to vector<16x128xf32>
    %31 = arith.mulf %23, %30 : vector<16x128xf32>
    %32 = arith.truncf %31 : vector<16x128xf32> to vector<16x128xbf16>
    %c0_18 = arith.constant 0 : index
    %c0_19 = arith.constant 0 : index
    %33 = vector.load %arg7[%c0_18, %c0_19] : memref<128x128xbf16, #tpu.memory_space<vmem>>, vector<128x128xbf16>
    %cst_20 = arith.constant dense<0.000000e+00> : vector<16x128xf32>
    %34 = tpu.matmul %32, %33, %cst_20 {dimension_numbers = #tpu.dot_dimension_numbers<[1], [0], [0], [1], [0, 0, 1, 1], [], []>} : vector<16x128xbf16>, vector<128x128xbf16>, vector<16x128xf32> -> vector<16x128xf32>
    %35 = arith.truncf %15 : vector<16x128xf32> to vector<16x128xbf16>
    %c0_21 = arith.constant 0 : index
    %c0_22 = arith.constant 0 : index
    %36 = vector.load %arg8[%c0_21, %c0_22] : memref<128x128xbf16, #tpu.memory_space<vmem>>, vector<128x128xbf16>
    %cst_23 = arith.constant dense<0.000000e+00> : vector<16x128xf32>
    %37 = tpu.matmul %35, %36, %cst_23 {dimension_numbers = #tpu.dot_dimension_numbers<[1], [0], [0], [1], [0, 0, 1, 1], [], []>} : vector<16x128xbf16>, vector<128x128xbf16>, vector<16x128xf32> -> vector<16x128xf32>
    %38 = arith.addf %34, %37 : vector<16x128xf32>
    %c0_24 = arith.constant 0 : index
    %c0_25 = arith.constant 0 : index
    %39 = vector.load %arg9[%c0_24, %c0_25] : memref<1x128xf32, #tpu.memory_space<vmem>>, vector<1x128xf32>
    %40 = vector.broadcast %39 : vector<1x128xf32> to vector<16x128xf32>
    %41 = arith.addf %38, %40 : vector<16x128xf32>
    %cst_26 = arith.constant 0.000000e+00 : f32
    %42 = vector.broadcast %cst_26 : f32 to vector<16x128xf32>
    %43 = arith.maximumf %41, %42 : vector<16x128xf32>
    %44 = arith.truncf %43 : vector<16x128xf32> to vector<16x128xbf16>
    %c0_27 = arith.constant 0 : index
    %c0_28 = arith.constant 0 : index
    %45 = vector.load %arg10[%c0_27, %c0_28] : memref<128x128xbf16, #tpu.memory_space<vmem>>, vector<128x128xbf16>
    %cst_29 = arith.constant dense<0.000000e+00> : vector<16x128xf32>
    %46 = tpu.matmul %44, %45, %cst_29 {dimension_numbers = #tpu.dot_dimension_numbers<[1], [0], [0], [1], [0, 0, 1, 1], [], []>} : vector<16x128xbf16>, vector<128x128xbf16>, vector<16x128xf32> -> vector<16x128xf32>
    %c0_30 = arith.constant 0 : index
    %c0_31 = arith.constant 0 : index
    %47 = vector.load %arg11[%c0_30, %c0_31] : memref<1x128xf32, #tpu.memory_space<vmem>>, vector<1x128xf32>
    %48 = vector.broadcast %47 : vector<1x128xf32> to vector<16x128xf32>
    %49 = arith.addf %46, %48 : vector<16x128xf32>
    %50 = arith.negf %49 : vector<16x128xf32>
    %51 = math.exp %50 : vector<16x128xf32>
    %cst_32 = arith.constant 1.000000e+00 : f32
    %52 = vector.broadcast %cst_32 : f32 to vector<16x128xf32>
    %53 = arith.addf %52, %51 : vector<16x128xf32>
    %54 = arith.divf %52, %53 : vector<16x128xf32>
    %55 = math.tanh %31 : vector<16x128xf32>
    %56 = math.tanh %15 : vector<16x128xf32>
    %57 = arith.subf %55, %56 : vector<16x128xf32>
    %58 = arith.mulf %54, %57 : vector<16x128xf32>
    %59 = arith.addf %56, %58 : vector<16x128xf32>
    %60 = tpu.concatenate %56, %55, %59 in 1 : vector<16x128xf32>, vector<16x128xf32>, vector<16x128xf32> -> vector<16x384xf32>
    %61 = arith.truncf %60 : vector<16x384xf32> to vector<16x384xbf16>
    %c0_33 = arith.constant 0 : index
    %c0_34 = arith.constant 0 : index
    %62 = vector.load %arg12[%c0_33, %c0_34] : memref<16x384xbf16, #tpu.memory_space<vmem>>, vector<16x384xbf16>
    tpu.vector_store %arg12[%c0_33, %c0_34], %61 {strides = array<i32>} : memref<16x384xbf16, #tpu.memory_space<vmem>>, vector<16x384xbf16>,
    return
  }
  func.func @transform_0(%arg0: i32) -> (i32, i32) {
    %c0_i32 = arith.constant 0 : i32
    %c0_i32_0 = arith.constant 0 : i32
    return %arg0, %c0_i32 : i32, i32
  }
  func.func @transform_1(%arg0: i32) -> (i32, i32) {
    %c0_i32 = arith.constant 0 : i32
    %c0_i32_0 = arith.constant 0 : i32
    return %arg0, %c0_i32 : i32, i32
  }
  func.func @transform_2(%arg0: i32) -> (i32, i32) {
    %c0_i32 = arith.constant 0 : i32
    %c0_i32_0 = arith.constant 0 : i32
    %c0_i32_1 = arith.constant 0 : i32
    return %c0_i32, %c0_i32_0 : i32, i32
  }
  func.func @transform_3(%arg0: i32) -> (i32, i32) {
    %c0_i32 = arith.constant 0 : i32
    %c0_i32_0 = arith.constant 0 : i32
    %c0_i32_1 = arith.constant 0 : i32
    return %c0_i32, %c0_i32_0 : i32, i32
  }
  func.func @transform_4(%arg0: i32) -> (i32, i32) {
    %c0_i32 = arith.constant 0 : i32
    %c0_i32_0 = arith.constant 0 : i32
    %c0_i32_1 = arith.constant 0 : i32
    return %c0_i32, %c0_i32_0 : i32, i32
  }
  func.func @transform_5(%arg0: i32) -> (i32, i32) {
    %c0_i32 = arith.constant 0 : i32
    %c0_i32_0 = arith.constant 0 : i32
    %c0_i32_1 = arith.constant 0 : i32
    return %c0_i32, %c0_i32_0 : i32, i32
  }
  func.func @transform_6(%arg0: i32) -> (i32, i32) {
    %c0_i32 = arith.constant 0 : i32
    %c0_i32_0 = arith.constant 0 : i32
    %c0_i32_1 = arith.constant 0 : i32
    return %c0_i32, %c0_i32_0 : i32, i32
  }
  func.func @transform_7(%arg0: i32) -> (i32, i32) {
    %c0_i32 = arith.constant 0 : i32
    %c0_i32_0 = arith.constant 0 : i32
    %c0_i32_1 = arith.constant 0 : i32
    return %c0_i32, %c0_i32_0 : i32, i32
  }
  func.func @transform_8(%arg0: i32) -> (i32, i32) {
    %c0_i32 = arith.constant 0 : i32
    %c0_i32_0 = arith.constant 0 : i32
    %c0_i32_1 = arith.constant 0 : i32
    return %c0_i32, %c0_i32_0 : i32, i32
  }
  func.func @transform_9(%arg0: i32) -> (i32, i32) {
    %c0_i32 = arith.constant 0 : i32
    %c0_i32_0 = arith.constant 0 : i32
    %c0_i32_1 = arith.constant 0 : i32
    return %c0_i32, %c0_i32_0 : i32, i32
  }
  func.func @transform_10(%arg0: i32) -> (i32, i32) {
    %c0_i32 = arith.constant 0 : i32
    %c0_i32_0 = arith.constant 0 : i32
    %c0_i32_1 = arith.constant 0 : i32
    return %c0_i32, %c0_i32_0 : i32, i32
  }
  func.func @transform_11(%arg0: i32) -> (i32, i32) {
    %c0_i32 = arith.constant 0 : i32
    %c0_i32_0 = arith.constant 0 : i32
    return %arg0, %c0_i32 : i32, i32
  }
}

</mosaic_0001>

<bundles_post_ra>
// kernel: tpu_custom_call.1
= control target key start
LH: loop header
LB: loop body
LE: loop exit
PB: predicated region body
PF: predicated region fallthrough
CT: control target
= control target key end

     0   :  { %16 = vsyncpa [#allocation3], 0  ;;  %s1808_s0 = inlined_call_operand.hbm [shape: bf16[16,192], index: 0, kind: input, shape index: {}]   ;;  %s1809_s1 = inlined_call_operand.hbm [shape: bf16[16,512], index: 1, kind: input, shape index: {}]   ;;  %s1810_s2 = inlined_call_operand.hbm [shape: bf16[192,128], index: 2, kind: input, shape index: {}]   ;;  %s1811_s3 = inlined_call_operand.vmem [shape: f32[1,128], index: 3, kind: input, shape index: {}]   ;;  %s1812_s4 = inlined_call_operand.hbm [shape: bf16[512,128], index: 4, kind: input, shape index: {}]   ;;  %s1813_s5 = inlined_call_operand.vmem [shape: f32[1,128], index: 5, kind: input, shape index: {}]   ;;  %s1814_s6 = inlined_call_operand.hbm [shape: bf16[128,128], index: 6, kind: input, shape index: {}]   ;;  %s1815_s7 = inlined_call_operand.hbm [shape: bf16[128,128], index: 7, kind: input, shape index: {}]   ;;  %s1816_s8 = inlined_call_operand.vmem [shape: f32[1,128], index: 8, kind: input, shape index: {}]   ;;  %s1817_s9 = inlined_call_operand.hbm [shape: bf16[128,128], index: 9, kind: input, shape index: {}]   ;;  %s1818_s10 = inlined_call_operand.vmem [shape: f32[1,128], index: 10, kind: input, shape index: {}]   ;;  %s1819_s11 = inlined_call_operand.hbm [shape: bf16[16,384], index: 11, kind: output, shape index: {}]  }
   0x1   :  { %17 = vsyncpa [#allocation6], 0 }
   0x2   :  { %18 = vsyncpa [#allocation9], 0 }
   0x3   :  { %19 = vsyncpa [#allocation12], 0 }
   0x4   :  { %20 = vsyncpa [#allocation4], 0  ;;  %s1603_s17 = smov [#allocation5]  }
   0x5   :  { %s38_s18 = sshll.u32 %s1603_s17, 4  ;;  %s39_s18 = int_to_ptr.vmem [resolvable:$true] %s38_s18 }
   0x6   :  { %s1441_s19 = scalar_lea.vmem %s39_s18, 512  ;;  %p1446_p1 = scmp.lt.s32.totalorder %s39_s18, %s39_s18 }
   0x7   :  { %p1442_p0 = scmp.ne.s32.totalorder %s39_s18, %s1441_s19  ;;  %p1447_p2 = scmp.lt.s32.totalorder %s1441_s19, %s1441_s19 }
   0x9   :  { %p1448_p3 = por %p1447_p2, %p1446_p1 }
   0xb   :  { %p1449_p4 = pnand %p1448_p3, %p1442_p0 }
   0xd   :  { %1452 = shalt.err (!%p1449_p4)
}
   0xe   :  { %s1604_s20 = smov 256   ;;  %s1605_s21 = smov 16  }
   0xf   :  { %44 = dma.hbm_to_vmem [thread:$0]  %s1809_s1, 512, %s39_s18, [#allocation6], %s1604_s20, %s1604_s20, %s1605_s21  }
  0x10   :  { %s1606_s24 = smov [#allocation8]   ;;  %s1607_s26 = smov [#allocation11]  }
  0x11   :  { %s64_s25 = sshll.u32 %s1606_s24, 4  ;;  %s90_s27 = sshll.u32 %s1607_s26, 4  ;;  %s65_s25 = int_to_ptr.vmem [resolvable:$true] %s64_s25  ;;  %s91_s27 = int_to_ptr.vmem [resolvable:$true] %s90_s27 }
  0x12   :  { %s1461_s28 = scalar_lea.vmem %s65_s25, 4096  ;;  %p1466_p6 = scmp.lt.s32.totalorder %s65_s25, %s65_s25 }
  0x13   :  { %p1462_p5 = scmp.ne.s32.totalorder %s65_s25, %s1461_s28  ;;  %p1467_p7 = scmp.lt.s32.totalorder %s1461_s28, %s1461_s28 }
  0x15   :  { %p1468_p8 = por %p1467_p7, %p1466_p6 }
  0x17   :  { %p1469_p9 = pnand %p1468_p8, %p1462_p5 }
  0x19   :  { %1472 = shalt.err (!%p1469_p9)
}
  0x1a   :  { %s1608_s29 = smov 64   ;;  %s1609_s30 = smov 4  }
  0x1b   :  { %70 = dma.hbm_to_vmem [thread:$0]  %s1812_s4, 4096, %s65_s25, [#allocation9], %s1608_s29, %s1608_s29, %s1609_s30  }
  0x1c   :  { %s1481_s1 = scalar_lea.vmem %s91_s27, 1024  ;;  %p1486_p11 = scmp.lt.s32.totalorder %s91_s27, %s91_s27 }
  0x1d   :  { %p1482_p10 = scmp.ne.s32.totalorder %s91_s27, %s1481_s1  ;;  %p1487_p12 = scmp.lt.s32.totalorder %s1481_s1, %s1481_s1 }
  0x1f   :  { %p1488_p13 = por %p1487_p12, %p1486_p11 }
  0x21   :  { %p1489_p0 = pnand %p1488_p13, %p1482_p10 }
  0x23   :  { %1492 = shalt.err (!%p1489_p0)
}
  0x24   :  { %96 = dma.hbm_to_vmem [thread:$0]  %s1815_s7, 1024, %s91_s27, [#allocation12], %s1608_s29, %s1608_s29, %s1609_s30  }
  0x25   :  { %s1610_s16 = smov [#allocation2]  }
  0x26   :  { %s26_s17 = sshll.u32 %s1610_s16, 4  ;;  %s27_s17 = int_to_ptr.vmem [resolvable:$true] %s26_s17 }
  0x27   :  { %s1501_s18 = scalar_lea.vmem %s27_s17, 256  ;;  %p1506_p2 = scmp.lt.s32.totalorder %s27_s17, %s27_s17 }
  0x28   :  { %p1502_p1 = scmp.ne.s32.totalorder %s27_s17, %s1501_s18  ;;  %p1507_p3 = scmp.lt.s32.totalorder %s1501_s18, %s1501_s18 }
  0x2a   :  { %p1508_p4 = por %p1507_p3, %p1506_p2 }
  0x2c   :  { %p1509_p5 = pnand %p1508_p4, %p1502_p1 }
  0x2e   :  { %1512 = shalt.err (!%p1509_p5)
}
  0x2f   :  { %s1611_s4 = smov 128   ;;  %s1612_s19 = smov 8  }
  0x30   :  { %32 = dma.hbm_to_vmem [thread:$0]  %s1808_s0, 256, %s27_s17, [#allocation3], %s1611_s4, %s1611_s4, %s1612_s19  }
  0x31   :  { %s1613_s22 = smov [#allocation7]   ;;  %s1614_s24 = smov [#allocation10]  }
  0x32   :  { %s50_s23 = sshll.u32 %s1613_s22, 4  ;;  %s78_s7 = sshll.u32 %s1614_s24, 4  ;;  %s51_s23 = int_to_ptr.vmem [resolvable:$true] %s50_s23  ;;  %s79_s7 = int_to_ptr.vmem [resolvable:$true] %s78_s7 }
  0x33   :  { %s1521_s25 = scalar_lea.vmem %s51_s23, 1536  ;;  %p1526_p7 = scmp.lt.s32.totalorder %s51_s23, %s51_s23 }
  0x34   :  { %p1522_p6 = scmp.ne.s32.totalorder %s51_s23, %s1521_s25  ;;  %p1527_p8 = scmp.lt.s32.totalorder %s1521_s25, %s1521_s25 }
  0x36   :  { %p1528_p9 = por %p1527_p8, %p1526_p7 }
  0x38   :  { %p1529_p10 = pnand %p1528_p9, %p1522_p6 }
  0x3a   :  { %1532 = shalt.err (!%p1529_p10)
}
  0x3b   :  { %56 = dma.hbm_to_vmem [thread:$0]  %s1810_s2, 1536, %s51_s23, [#allocation6], %s1608_s29, %s1608_s29, %s1609_s30  }
  0x3c   :  { %s1541_s0 = scalar_lea.vmem %s79_s7, 1024  ;;  %p1546_p12 = scmp.lt.s32.totalorder %s79_s7, %s79_s7 }
  0x3d   :  { %p1542_p11 = scmp.ne.s32.totalorder %s79_s7, %s1541_s0  ;;  %p1547_p13 = scmp.lt.s32.totalorder %s1541_s0, %s1541_s0 }
  0x3f   :  { %p1548_p0 = por %p1547_p13, %p1546_p12 }
  0x41   :  { %p1549_p1 = pnand %p1548_p0, %p1542_p11 }
  0x43   :  { %1552 = shalt.err (!%p1549_p1)
}
  0x44   :  { %84 = dma.hbm_to_vmem [thread:$0]  %s1814_s6, 1024, %s79_s7, [#allocation9], %s1608_s29, %s1608_s29, %s1609_s30  }
  0x45   :  { %s1615_s13 = smov [#allocation13]  }
  0x46   :  { %s104_s1 = sshll.u32 %s1615_s13, 4  ;;  %s105_s1 = int_to_ptr.vmem [resolvable:$true] %s104_s1 }
  0x47   :  { %s1561_s14 = scalar_lea.vmem %s105_s1, 1024  ;;  %p1566_p3 = scmp.lt.s32.totalorder %s105_s1, %s105_s1 }
  0x48   :  { %p1562_p2 = scmp.ne.s32.totalorder %s105_s1, %s1561_s14  ;;  %p1567_p4 = scmp.lt.s32.totalorder %s1561_s14, %s1561_s14 }
  0x4a   :  { %p1568_p5 = por %p1567_p4, %p1566_p3 }
  0x4c   :  { %p1569_p6 = pnand %p1568_p5, %p1562_p2 }
  0x4e   :  { %1572 = shalt.err (!%p1569_p6)
}
  0x4f   :  { %110 = dma.hbm_to_vmem [thread:$0]  %s1817_s9, 1024, %s105_s1, [#allocation12], %s1608_s29, %s1608_s29, %s1609_s30  }
  0x50   :  { %1593 = dma.done.wait [#allocation3], 256  }
  0x51   :  { %1594 = vsyncadd [#allocation3], 4294967040 }
  0x52   :  { %1595 = dma.done.wait [#allocation6], 2048  }
  0x53   :  { %1596 = vsyncadd [#allocation6], 4294965248 }
  0x54   :  { %1597 = dma.done.wait [#allocation9], 5120  }
  0x55   :  { %1598 = vsyncadd [#allocation9], 4294962176 }
  0x56   :  { %1599 = dma.done.wait [#allocation12], 2048  }
  0x57   :  { %1600 = vsyncadd [#allocation12], 4294965248  ;;  %v1616_v0 = vmov 0   ;;  %v1332_v1 = vld [vmem:[#allocation7 + $0x38] sm:$0xff]   ;;  %v1335_v4 = vld [vmem:[#allocation7 + $0x30] sm:$0xff]   ;;  %vm249_vm0 = vcmask 523264  }
  0x58   :  { %253 = vmatprep.subr.bf16.mxu0 %v1616_v0  ;;  %v1333_v2 = vld [vmem:[#allocation8 + $0x78] sm:$0xff]   ;;  %v1336_v5 = vld [vmem:[#allocation8 + $0x70] sm:$0xff]   ;;  %v1338_v7 = vld [vmem:[#allocation7 + $0x28] sm:$0xff]   ;;  %v1617_v52 = vmov 0.0   ;;  %vm1618_vm1 = vmmov 0  }
  0x59   :  { %254 = vmatpush1.bf16.msra.mxu0 %v1332_v1  ;;  %v1334_v3 = vld [vmem:[#allocation8 + $0x38] sm:$0xff]   ;;  %1182 = vmatprep.subr.bf16.mxu1 %v1333_v2  ;;  %v1337_v6 = vld [vmem:[#allocation8 + $0x30] sm:$0xff]   ;;  %v1339_v8 = vld [vmem:[#allocation8 + $0x68] sm:$0xff]  }
  0x5a   :  { %255 = vmatprep.subr.bf16.mxu0 %v1616_v0  ;;  %1183 = vmatpush3.bf16.msra.mxu1 %v1334_v3  ;;  %v1340_v9 = vld [vmem:[#allocation8 + $0x28] sm:$0xff]   ;;  %v1341_v10 = vld [vmem:[#allocation7 + $0x20] sm:$0xff]   ;;  %v1345_v13 = vld [vmem:[#allocation8 + $0x58] sm:$0xff]  }
  0x5b   :  { %1184 = vmatprep.subr.bf16.mxu1 %v1336_v5  ;;  %v1342_v11 = vld [vmem:[#allocation8 + $0x60] sm:$0xff]   ;;  %v1344_v14 = vld [vmem:[#allocation7 + $0x18] sm:$0xff]   ;;  %v1348_v16 = vld [vmem:[#allocation8 + $0x50] sm:$0xff]  }
  0x5c   :  { %v1343_v12 = vld [vmem:[#allocation8 + $0x20] sm:$0xff]   ;;  %v1346_v15 = vld [vmem:[#allocation8 + $0x18] sm:$0xff]   ;;  %v1347_v17 = vld [vmem:[#allocation7 + $0x10] sm:$0xff]  }
  0x5d   :  { %256 = vmatpush1.bf16.msra.mxu0 %v1335_v4  ;;  %v1349_v18 = vld [vmem:[#allocation8 + $0x10] sm:$0xff]   ;;  %v1351_v19 = vld [vmem:[#allocation8 + $0x48] sm:$0xff]   ;;  %v1354_v22 = vld [vmem:[#allocation8 + $0x40] sm:$0xff]  }
  0x5e   :  { %257 = vmatprep.subr.bf16.mxu0 %v1616_v0  ;;  %1185 = vmatpush3.bf16.msra.mxu1 %v1337_v6  ;;  %v1350_v20 = vld [vmem:[#allocation7 + $0x8] sm:$0xff]   ;;  %v1358_v23 = vld [vmem:[#allocation5 + $0x4] ss:$16 sps:$4 sm:$0xff]   ;;  %v1360_v26 = vld [vmem:[#allocation8 + $0xf8] sm:$0xff]  }
  0x5f   :  { %1186 = vmatprep.subr.bf16.mxu1 %v1339_v8  ;;  %v1352_v21 = vld [vmem:[#allocation8 + $0x8] sm:$0xff]   ;;  %v1353_v24 = vld [vmem:[#allocation7] sm:$0xff]   ;;  %627 = vmatprep.mubr.bf16.mxu1 %v1358_v23  ;;  %v1359_v27 = vld [vmem:[#allocation7 + $0x58] sm:$0xff]  }
  0x60   :  { %v1355_v25 = vld [vmem:[#allocation8] sm:$0xff]   ;;  %v1361_v29 = vld [vmem:[#allocation8 + $0xb8] sm:$0xff]   ;;  %v1363_v30 = vld [vmem:[#allocation8 + $0xf0] sm:$0xff]  }
  0x61   :  { %258 = vmatpush1.bf16.msra.mxu0 %v1338_v7  ;;  %v1356_v28 = vld [vmem:[#allocation5] ss:$16 sps:$4 sm:$0xff]   ;;  %v1366_v33 = vld [vmem:[#allocation8 + $0xe8] sm:$0xff]   ;;  %v1373_v35 = vld [vmem:[#allocation2 + $0x4] ss:$8 sps:$4 sm:$0xff]  }
  0x62   :  { %259 = vmatprep.subr.bf16.mxu0 %v1616_v0  ;;  %1187 = vmatpush3.bf16.msra.mxu1 %v1340_v9  ;;  %v1362_v31 = vld [vmem:[#allocation7 + $0x50] sm:$0xff]   ;;  %v1365_v34 = vld [vmem:[#allocation7 + $0x48] sm:$0xff]   ;;  %v1369_v37 = vld [vmem:[#allocation8 + $0xe0] sm:$0xff]  }
  0x63   :  { %1188 = vmatprep.subr.bf16.mxu1 %v1342_v11  ;;  %v1364_v32 = vld [vmem:[#allocation8 + $0xb0] sm:$0xff]   ;;  %v1367_v36 = vld [vmem:[#allocation8 + $0xa8] sm:$0xff]   ;;  %1108 = vmatprep.mubr.msk.bf16.mxu0 %vm249_vm0, %v1373_v35  ;;  %v1368_v38 = vld [vmem:[#allocation7 + $0x40] sm:$0xff]  }
  0x64   :  { %v1370_v39 = vld [vmem:[#allocation8 + $0xa0] sm:$0xff]   ;;  %v1371_v40 = vld [vmem:[#allocation2] ss:$8 sps:$4 sm:$0xff]   ;;  %v1384_v44 = vld [vmem:[#allocation5 + $0xc] ss:$16 sps:$4 sm:$0xff]  }
  0x65   :  { %260 = vmatpush1.bf16.msra.mxu0 %v1341_v10  ;;  %v1374_v41 = vld [vmem:[#allocation8 + $0xd8] sm:$0xff]   ;;  %v1376_v43 = vld [vmem:[#allocation8 + $0xd0] sm:$0xff]   ;;  %v1378_v46 = vld [vmem:[#allocation8 + $0xc8] sm:$0xff]  }
  0x66   :  { %261 = vmatprep.subr.bf16.mxu0 %v1616_v0  ;;  %1189 = vmatpush3.bf16.msra.mxu1 %v1343_v12  ;;  %v1375_v42 = vld [vmem:[#allocation8 + $0x98] sm:$0xff]   ;;  %v1377_v45 = vld [vmem:[#allocation8 + $0x90] sm:$0xff]   ;;  %v1379_v47 = vld [vmem:[#allocation8 + $0x88] sm:$0xff]  }
  0x67   :  { %1190 = vmatprep.subr.bf16.mxu1 %v1345_v13  ;;  %v1380_v48 = vld [vmem:[#allocation8 + $0xc0] sm:$0xff]   ;;  %v1382_v50 = vld [vmem:[#allocation5 + $0x8] ss:$16 sps:$4 sm:$0xff]   ;;  %v1386_v53 = vld [vmem:[#allocation11 + $0x30] sm:$0xff]  }
  0x68   :  { %v1381_v49 = vld [vmem:[#allocation8 + $0x80] sm:$0xff]   ;;  %v1385_v51 = vld [vmem:[#allocation11 + $0x38] sm:$0xff]   ;;  %v1093_v54 = vld [vmem:[%s1811_s3] ss:$0 sm:$0xff] }
  0x69   :  { %262 = vmatpush1.bf16.msra.mxu0 %v1344_v14  ;;  %v1387_v6 = vld [vmem:[#allocation11 + $0x28] sm:$0xff]   ;;  %v1109_v7 = vld [vmem:[%s1813_s5] ss:$0 sm:$0xff]  ;;  %v1388_v13 = vld [vmem:[#allocation11 + $0x20] sm:$0xff]  }
  0x6a   :  { %263 = vmatprep.subr.bf16.mxu0 %v1616_v0  ;;  %1191 = vmatpush3.bf16.msra.mxu1 %v1346_v15  ;;  %v1400_v35 = vld [vmem:[#allocation10] sm:$0xff]  }
  0x6b   :  { %1192 = vmatprep.subr.bf16.mxu1 %v1348_v16  ;;  %v1389_v16 = vld [vmem:[#allocation11 + $0x18] sm:$0xff]  }
  0x6d   :  { %264 = vmatpush1.bf16.msra.mxu0 %v1347_v17  ;;  %v1391_v17 = vld [vmem:[#allocation10 + $0x38] sm:$0xff]  }
  0x6e   :  { %265 = vmatprep.subr.bf16.mxu0 %v1616_v0  ;;  %1193 = vmatpush3.bf16.msra.mxu1 %v1349_v18 }
  0x6f   :  { %1194 = vmatprep.subr.bf16.mxu1 %v1351_v19 }
  0x71   :  { %266 = vmatpush1.bf16.msra.mxu0 %v1350_v20 }
  0x72   :  { %267 = vmatprep.subr.bf16.mxu0 %v1616_v0  ;;  %1195 = vmatpush3.bf16.msra.mxu1 %v1352_v21 }
  0x73   :  { %1196 = vmatprep.subr.bf16.mxu1 %v1354_v22  ;;  %v1393_v22 = vld [vmem:[#allocation10 + $0x30] sm:$0xff]  }
  0x75   :  { %268 = vmatpush1.bf16.msra.mxu0 %v1353_v24 }
  0x76   :  { %277 = vmatprep.subr.bf16.mxu0 %v1616_v0  ;;  %1197 = vmatpush3.bf16.msra.mxu1 %v1355_v25  ;;  %v1390_v25 = vld [vmem:[#allocation11 + $0x10] sm:$0xff]  }
  0x77   :  { %1204 = vmatprep.subr.bf16.mxu1 %v1360_v26 }
  0x79   :  { %278 = vmatpush2.bf16.msra.mxu0 %v1359_v27  ;;  %628 = vmatmul.mubr.bf16.vlgmr.msra.gmra.mxu1 %v1356_v28  ;;  %v1392_v28 = vld [vmem:[#allocation11 + $0x8] sm:$0xff]  }
  0x7a   :  { %279 = vmatprep.subr.bf16.mxu0 %v1616_v0  ;;  %1205 = vmatpush3.bf16.msra.mxu1 %v1361_v29  ;;  %v1394_v29 = vld [vmem:[#allocation11] sm:$0xff]  }
  0x7b   :  { %1206 = vmatprep.subr.bf16.mxu1 %v1363_v30  ;;  %668 = vmatprep.mubr.bf16.mxu1 %v1384_v44  ;;  %v1395_v30 = vld [vmem:[#allocation10 + $0x28] sm:$0xff]  }
  0x7d   :  { %280 = vmatpush2.bf16.msra.mxu0 %v1362_v31  ;;  %v1396_v31 = vld [vmem:[#allocation10 + $0x20] sm:$0xff]  }
  0x7e   :  { %281 = vmatprep.subr.bf16.mxu0 %v1616_v0  ;;  %1207 = vmatpush3.bf16.msra.mxu1 %v1364_v32  ;;  %v1397_v32 = vld [vmem:[#allocation10 + $0x18] sm:$0xff]  }
  0x7f   :  { %1208 = vmatprep.subr.bf16.mxu1 %v1366_v33  ;;  %v1398_v33 = vld [vmem:[#allocation10 + $0x10] sm:$0xff]  }
  0x81   :  { %282 = vmatpush2.bf16.msra.mxu0 %v1365_v34  ;;  %v1399_v34 = vld [vmem:[#allocation10 + $0x8] sm:$0xff]  }
  0x82   :  { %283 = vmatprep.subr.bf16.mxu0 %v1616_v0  ;;  %1209 = vmatpush3.bf16.msra.mxu1 %v1367_v36 }
  0x83   :  { %1210 = vmatprep.subr.bf16.mxu1 %v1369_v37 }
  0x85   :  { %284 = vmatpush2.bf16.msra.mxu0 %v1368_v38 }
  0x86   :  { %1211 = vmatpush3.bf16.msra.mxu1 %v1370_v39  ;;  %1253 = vmatprep.subr.bf16.mxu0 %v1617_v52 }
  0x87   :  { %1212 = vmatprep.subr.bf16.mxu1 %v1374_v41 }
  0x88   :  { %286 = vmatmul.mubr.bf16.vlgmr.msra.gmra.mxu0 %v1371_v40 }
  0x89   :  { %1254 = vmatpush3.bf16.msra.mxu0 %v1385_v51  ;;  %1269 = vmatprep.mubr.msk.bf16.mxu0 %vm1618_vm1, %v1617_v52 }
  0x8a   :  { %1213 = vmatpush3.bf16.msra.mxu1 %v1375_v42  ;;  %1255 = vmatprep.subr.bf16.mxu0 %v1617_v52 }
  0x8b   :  { %1214 = vmatprep.subr.bf16.mxu1 %v1376_v43 }
  0x8d   :  { %1256 = vmatpush3.bf16.msra.mxu0 %v1386_v53 }
  0x8e   :  { %1215 = vmatpush3.bf16.msra.mxu1 %v1377_v45  ;;  %1257 = vmatprep.subr.bf16.mxu0 %v1617_v52 }
  0x8f   :  { %1216 = vmatprep.subr.bf16.mxu1 %v1378_v46 }
  0x91   :  { %1258 = vmatpush3.bf16.msra.mxu0 %v1387_v6 }
  0x92   :  { %1217 = vmatpush3.bf16.msra.mxu1 %v1379_v47  ;;  %1259 = vmatprep.subr.bf16.mxu0 %v1617_v52 }
  0x93   :  { %1218 = vmatprep.subr.bf16.mxu1 %v1380_v48 }
  0x95   :  { %1260 = vmatpush3.bf16.msra.mxu0 %v1388_v13 }
  0x96   :  { %1219 = vmatpush3.bf16.msra.mxu1 %v1381_v49  ;;  %1261 = vmatprep.subr.bf16.mxu0 %v1617_v52 }
  0x97   :  { %1273 = vmatprep.subr.bf16.mxu1 %v1617_v52 }
  0x99   :  { %669 = vmatmul.mubr.bf16.vlgmr.msra.gmra.mxu1 %v1382_v50  ;;  %1262 = vmatpush3.bf16.msra.mxu0 %v1389_v16 }
  0x9a   :  { %1274 = vmatpush3.bf16.msra.mxu1 %v1391_v17  ;;  %1263 = vmatprep.subr.bf16.mxu0 %v1617_v52 }
  0x9b   :  { %1275 = vmatprep.subr.bf16.mxu1 %v1617_v52  ;;  %1289 = vmatprep.mubr.msk.bf16.mxu1 %vm1618_vm1, %v1617_v52 }
  0x9d   :  { %1264 = vmatpush3.bf16.msra.mxu0 %v1390_v25 }
  0x9e   :  { %1276 = vmatpush3.bf16.msra.mxu1 %v1393_v22  ;;  %1265 = vmatprep.subr.bf16.mxu0 %v1617_v52 }
  0x9f   :  { %1277 = vmatprep.subr.bf16.mxu1 %v1617_v52 }
  0xa1   :  { %1266 = vmatpush3.bf16.msra.mxu0 %v1392_v28 }
  0xa2   :  { %1267 = vmatprep.subr.bf16.mxu0 %v1617_v52  ;;  %1278 = vmatpush3.bf16.msra.mxu1 %v1395_v30 }
  0xa3   :  { %1279 = vmatprep.subr.bf16.mxu1 %v1617_v52 }
  0xa5   :  { %1268 = vmatpush3.bf16.msra.mxu0 %v1394_v29 }
  0xa6   :  { %1293 = vmatprep.subr.bf16.mxu0 %v1617_v52  ;;  %1280 = vmatpush3.bf16.msra.mxu1 %v1396_v31 }
  0xa7   :  { %1281 = vmatprep.subr.bf16.mxu1 %v1617_v52 }
  0xaa   :  { %1282 = vmatpush3.bf16.msra.mxu1 %v1397_v32 }
  0xab   :  { %1283 = vmatprep.subr.bf16.mxu1 %v1617_v52 }
  0xae   :  { %1284 = vmatpush3.bf16.msra.mxu1 %v1398_v33 }
  0xaf   :  { %1285 = vmatprep.subr.bf16.mxu1 %v1617_v52 }
  0xb2   :  { %1286 = vmatpush3.bf16.msra.mxu1 %v1399_v34 }
  0xb3   :  { %1287 = vmatprep.subr.bf16.mxu1 %v1617_v52 }
  0xb6   :  { %1288 = vmatpush3.bf16.msra.mxu1 %v1400_v35 }
 0x139   :  { %v1198_v59 = vpop.f32.mrf.mxu1 }
 0x13b   :  { %v1199_v1 = vpop.f32.mrf.mxu1 }
 0x13c   :  { %v1200_v5 = vadd.f32 %v1199_v1, %v1198_v59  ;;  %v1405_v1 = vld [vmem:[#allocation13 + $0x18] sm:$0xff]  }
 0x13d   :  { %v1201_v3 = vpop.f32.mrf.mxu1 }
 0x13e   :  { %v630_v10 = vadd.f32 %v1200_v5, %v1109_v7 }
 0x13f   :  { %v1202_v4 = vpop.f32.mrf.mxu1 }
 0x140   :  { %v1203_v11 = vadd.f32 %v1202_v4, %v1201_v3  ;;  %v1407_v3 = vld [vmem:[#allocation13 + $0x8] sm:$0xff]   ;;  %v1408_v4 = vld [vmem:[#allocation13] sm:$0xff]  }
 0x142   :  { %v633_v19 = vadd.f32 %v1203_v11, %v1109_v7  ;;  %v1162_v11 = vld [vmem:[%s1816_s8] ss:$0 sm:$0xff]  ;;  %s1619_s8 = smov [#allocation14]  }
 0x148   :  { %v287_v55 = vpop.f32.mrf.mxu0 }
 0x149   :  { %v288_v56 = vadd.f32 %v1093_v54, %v287_v55 }
 0x14a   :  { %v289_v57 = vpop.f32.mrf.mxu0 }
 0x14b   :  { %v1737_v58 = vmax.f32 %v288_v56, 0.0 }
 0x14c   :  { %v290_v60 = vpop.f32.mrf.mxu0 }
 0x14d   :  { %v291_v61 = vadd.f32 %v1093_v54, %v290_v60  ;;  %v296_v62 = vmul.f32 %v1737_v58, %v1737_v58 }
 0x14e   :  { %v292_v63 = vpop.f32.mrf.mxu0 }
 0x14f   :  { %v1741_v0 = vmax.f32 %v291_v61, 0.0  ;;  %298 = vadd.xlane.f32.xlu0 %v296_v62  ;;  %v1401_v61 = vld [vmem:[#allocation13 + $0x38] sm:$0xff]   ;;  %v1402_v62 = vld [vmem:[#allocation13 + $0x30] sm:$0xff]   ;;  %v1403_v63 = vld [vmem:[#allocation13 + $0x28] sm:$0xff]  }
 0x151   :  { %v297_v2 = vmul.f32 %v1741_v0, %v1741_v0 }
 0x153   :  { %300 = vadd.xlane.f32.xlu0 %v297_v2  ;;  %v1406_v2 = vld [vmem:[#allocation13 + $0x10] sm:$0xff]  }
 0x159   :  { %v1220_v8 = vpop.f32.mrf.mxu1 }
 0x15b   :  { %v1221_v9 = vpop.f32.mrf.mxu1 }
 0x15c   :  { %v1222_v12 = vadd.f32 %v1221_v9, %v1220_v8 }
 0x15d   :  { %v1223_v14 = vpop.f32.mrf.mxu1 }
 0x15e   :  { %v671_v15 = vadd.f32 %v1222_v12, %v630_v10 }
 0x15f   :  { %v1224_v18 = vpop.f32.mrf.mxu1 }
 0x160   :  { %v1225_v20 = vadd.f32 %v1224_v18, %v1223_v14  ;;  %v1750_v21 = vmax.f32 %v671_v15, 0.0 }
 0x162   :  { %v674_v23 = vadd.f32 %v1225_v20, %v633_v19  ;;  %v679_v24 = vmul.f32 %v1750_v21, %v1750_v21  ;;  %v1163_v20 = vld [vmem:[%s1818_s10] ss:$0 sm:$0xff]  ;;  %s1078_s10 = sshll.u32 %s1619_s8, 4  ;;  %s1079_s10 = int_to_ptr.vmem [resolvable:$true] %s1078_s10 }
 0x163   :  { %s1573_s18 = scalar_lea.vmem %s1079_s10, 384  ;;  %p1578_p8 = scmp.lt.s32.totalorder %s1079_s10, %s1079_s10 }
 0x164   :  { %v678_v26 = vmax.f32 %v674_v23, 0.0  ;;  %681 = vadd.xlane.f32.xlu1 %v679_v24  ;;  %p1574_p7 = scmp.ne.s32.totalorder %s1079_s10, %s1573_s18  ;;  %p1579_p9 = scmp.lt.s32.totalorder %s1573_s18, %s1573_s18 }
 0x166   :  { %v680_v27 = vmul.f32 %v678_v26, %v678_v26  ;;  %p1580_p10 = por %p1579_p9, %p1578_p8 }
 0x168   :  { %683 = vadd.xlane.f32.xlu1 %v680_v27  ;;  %p1581_p11 = pnand %p1580_p10, %p1574_p7 }
 0x1d8   :  { %v299_v36 = vpop.xlane.xlu0 %298 }
 0x1d9   :  { %v302_v37 = vmax.f32 %v299_v36, 1e-24 }
 0x1db   :  { %1409 = vrsqrt.f32 %v302_v37 }
 0x1dc   :  { %v301_v38 = vpop.xlane.xlu0 %300 }
 0x1dd   :  { %v303_v39 = vmax.f32 %v301_v38, 1e-24 }
 0x1df   :  { %1411 = vrsqrt.f32 %v303_v39 }
 0x1e8   :  { %v1410_v40 = vpop.eup %1409 }
 0x1e9   :  { %v306_v42 = vmul.f32 %v1410_v40, %v1737_v58 }
 0x1ec   :  { %v1412_v41 = vpop.eup %1411 }
 0x1ed   :  { %v307_v43 = vmul.f32 %v1412_v41, %v1741_v0  ;;  %v682_v44 = vpop.xlane.xlu1 %681  ;;  %v1404_v0 = vld [vmem:[#allocation13 + $0x20] sm:$0xff]  }
 0x1ee   :  { %v685_v45 = vmax.f32 %v682_v44, 1e-24 }
 0x1ef   :  { %v708_v46 = vpack.c.bf16 %v307_v43, %v306_v42 }
 0x1f0   :  { %1413 = vrsqrt.f32 %v685_v45 }
 0x1f1   :  { %1270 = vmatmul.mubr.bf16.vlgmr.msra.gmra.mxu0 %v708_v46  ;;  %v684_v47 = vpop.xlane.xlu1 %683 }
 0x1f2   :  { %1309 = vmatprep.mubr.msk.bf16.mxu0 %vm1618_vm1, %v1617_v52  ;;  %v686_v48 = vmax.f32 %v684_v47, 1e-24  ;;  %1294 = vmatpush3.bf16.msra.mxu0 %v1401_v61 }
 0x1f3   :  { %1295 = vmatprep.subr.bf16.mxu0 %v1617_v52 }
 0x1f4   :  { %1415 = vrsqrt.f32 %v686_v48 }
 0x1f5   :  { %1417 = vtanh.f32 %v306_v42 }
 0x1f6   :  { %1296 = vmatpush3.bf16.msra.mxu0 %v1402_v62 }
 0x1f7   :  { %1297 = vmatprep.subr.bf16.mxu0 %v1617_v52 }
 0x1fa   :  { %1298 = vmatpush3.bf16.msra.mxu0 %v1403_v63 }
 0x1fb   :  { %1299 = vmatprep.subr.bf16.mxu0 %v1617_v52 }
 0x1fd   :  { %v1414_v49 = vpop.eup %1413 }
 0x1fe   :  { %v689_v50 = vmul.f32 %v1414_v49, %v1750_v21  ;;  %1300 = vmatpush3.bf16.msra.mxu0 %v1404_v0 }
 0x1ff   :  { %1301 = vmatprep.subr.bf16.mxu0 %v1617_v52 }
 0x200   :  { %1419 = vtanh.f32 %v689_v50 }
 0x201   :  { %v1416_v51 = vpop.eup %1415  ;;  %1421 = vtanh.f32 %v307_v43 }
 0x202   :  { %v690_v53 = vmul.f32 %v1416_v51, %v678_v26  ;;  %v1774_v55 = vpop.eup %1417  ;;  %1302 = vmatpush3.bf16.msra.mxu0 %v1405_v1 }
 0x203   :  { %1303 = vmatprep.subr.bf16.mxu0 %v1617_v52 }
 0x204   :  { %v691_v54 = vpack.c.bf16 %v690_v53, %v689_v50  ;;  %1423 = vtanh.f32 %v690_v53 }
 0x206   :  { %1290 = vmatmul.mubr.bf16.vlgmr.msra.gmra.mxu1 %v691_v54  ;;  %1304 = vmatpush3.bf16.msra.mxu0 %v1406_v2 }
 0x207   :  { %1305 = vmatprep.subr.bf16.mxu0 %v1617_v52 }
 0x20a   :  { %1306 = vmatpush3.bf16.msra.mxu0 %v1407_v3 }
 0x20b   :  { %1307 = vmatprep.subr.bf16.mxu0 %v1617_v52 }
 0x20d   :  { %v1776_v56 = vpop.eup %1419 }
 0x20e   :  { %v1178_v57 = vpack.c.bf16 %v1776_v56, %v1774_v55  ;;  %v1780_v58 = vpop.eup %1421  ;;  %1308 = vmatpush3.bf16.msra.mxu0 %v1408_v4  ;;  %v1043_v33 = vsub.f32 %v1776_v56, %v1774_v55 }
 0x210   :  { %1069 = vst [vmem:[#allocation14] sm:$0xff] %v1178_v57 }
 0x211   :  { %v1782_v59 = vpop.eup %1423 }
 0x212   :  { %v1180_v60 = vpack.c.bf16 %v1782_v59, %v1780_v58  ;;  %v1044_v36 = vsub.f32 %v1782_v59, %v1780_v58 }
 0x214   :  { %1071 = vst [vmem:[#allocation14 + $0xc] sm:$0xff] %v1180_v60 }
 0x2b1   :  { %v807_v5 = vpop.f32.mrf.mxu0 }
 0x2b3   :  { %v1271_v6 = vpop.f32.mrf.mxu0 }
 0x2b5   :  { %v810_v7 = vpop.f32.mrf.mxu0 }
 0x2b7   :  { %v1272_v8 = vpop.f32.mrf.mxu0 }
 0x2c6   :  { %v896_v9 = vpop.f32.mrf.mxu1 }
 0x2c7   :  { %v897_v10 = vadd.f32 %v896_v9, %v807_v5 }
 0x2c8   :  { %v1291_v12 = vpop.f32.mrf.mxu1 }
 0x2c9   :  { %v910_v14 = vadd.f32 %v1162_v11, %v897_v10 }
 0x2ca   :  { %v899_v13 = vpop.f32.mrf.mxu1 }
 0x2cb   :  { %v900_v15 = vadd.f32 %v899_v13, %v810_v7  ;;  %v912_v18 = vmax.f32 %v910_v14, 0.0 }
 0x2cc   :  { %v1292_v16 = vpop.f32.mrf.mxu1 }
 0x2cd   :  { %v911_v17 = vadd.f32 %v1162_v11, %v900_v15 }
 0x2cf   :  { %v913_v52 = vmax.f32 %v911_v17, 0.0 }
 0x2d1   :  { %v914_v19 = vpack.c.bf16 %v913_v52, %v912_v18 }
 0x2d3   :  { %1310 = vmatmul.mubr.bf16.vlgmr.msra.gmra.mxu0 %v914_v19 }
 0x393   :  { %v1020_v21 = vpop.f32.mrf.mxu0 }
 0x394   :  { %v1021_v22 = vadd.f32 %v1163_v20, %v1020_v21 }
 0x395   :  { %v1311_v23 = vpop.f32.mrf.mxu0 }
 0x396   :  { %v1172_v24 = vmul.f32 -1.442695, %v1021_v22 }
 0x397   :  { %v1023_v25 = vpop.f32.mrf.mxu0 }
 0x398   :  { %1425 = vpow2.f32 %v1172_v24  ;;  %v1024_v26 = vadd.f32 %v1163_v20, %v1023_v25 }
 0x399   :  { %v1312_v27 = vpop.f32.mrf.mxu0 }
 0x39a   :  { %v1173_v28 = vmul.f32 -1.442695, %v1024_v26 }
 0x39c   :  { %1427 = vpow2.f32 %v1173_v28 }
 0x3a5   :  { %v1426_v29 = vpop.eup %1425 }
 0x3a6   :  { %v1033_v30 = vadd.f32 1.0, %v1426_v29 }
 0x3a8   :  { %1429 = vrcp.f32 %v1033_v30 }
 0x3a9   :  { %v1428_v31 = vpop.eup %1427 }
 0x3aa   :  { %v1034_v32 = vadd.f32 1.0, %v1428_v31 }
 0x3ac   :  { %1431 = vrcp.f32 %v1034_v32 }
 0x3b5   :  { %v1430_v34 = vpop.eup %1429 }
 0x3b6   :  { %v1045_v35 = vmul.f32 %v1430_v34, %v1043_v33 }
 0x3b8   :  { %v1047_v37 = vadd.f32 %v1774_v55, %v1045_v35 }
 0x3b9   :  { %v1432_v38 = vpop.eup %1431 }
 0x3ba   :  { %v1046_v39 = vmul.f32 %v1432_v38, %v1044_v36  ;;  %v1179_v40 = vpack.c.bf16 %v1047_v37, %v1047_v37 }
 0x3bc   :  { %v1048_v41 = vadd.f32 %v1780_v58, %v1046_v39  ;;  %1070 = vst [vmem:[#allocation14 + $0x8] sm:$0xf] %v1179_v40 }
 0x3be   :  { %v1181_v42 = vpack.c.bf16 %v1048_v41, %v1048_v41 }
 0x3c0   :  { %1072 = vst [vmem:[#allocation14 + $0x14] sm:$0xf] %v1181_v42 }
 0x3c1   :  { %1584 = shalt.err (!%p1581_p11)
}
 0x3c2   :  { %s1620_s4 = smov 192   ;;  %s1621_s19 = smov 12  }
 0x3c3   :  { %1084 = dma.vmem_to_hbm [thread:$0]  %s1079_s10, 384, %s1819_s11, [#allocation4], %s1620_s4, %s1620_s4, %s1621_s19  }
 0x3c4   :  { %1601 = dma.done.wait [#allocation4], 384  }
 0x3c5   :  { %1602 = vsyncadd [#allocation4], 4294966912 }
 0x3c6   :  { %1088 = vsyncpa [#allocation3], 1 }
 0x3c7   :  { %1089 = vsyncpa [#allocation6], 1 }
 0x3c8   :  { %1090 = vsyncpa [#allocation9], 1 }
 0x3c9   :  { %1091 = vsyncpa [#allocation12], 1 }
 0x3ca   :  { %1092 = vsyncpa [#allocation4], 1 }

</bundles_post_ra>
